<compile_context>
chip_gen: v6e
topology: v6e:2x2x1
jax: 0.10.0
libtpu: 0.0.40
codegen_flags: <defaults>
</compile_context>

<pallas_src>
import math

import jax
import jax.numpy as jnp
from jax import lax
from jax.experimental import pallas as pl
from jax.experimental.pallas import tpu as pltpu


# --------------------------- tiling helper ---------------------------------

def _pick_tile(s, target):
    """Largest tile <= target that divides s and is a multiple of 8 (else s)."""
    if s <= target:
        return s
    for t in range(target, 7, -1):
        if s % t == 0 and t % 8 == 0:
            return t
    return s


# ----------------- kernel A: GroupNorm statistics (sum, sumsq) -------------

def _gn_stats_kernel(x_ref, sum_ref, sumsq_ref):
    @pl.when(pl.program_id(1) == 0)
    def _():
        sum_ref[...] = jnp.zeros_like(sum_ref)
        sumsq_ref[...] = jnp.zeros_like(sumsq_ref)

    x = x_ref[0].astype(jnp.float32)                        # (Ts, C)
    sum_ref[0] = sum_ref[0] + jnp.sum(x, axis=0, keepdims=True)
    sumsq_ref[0] = sumsq_ref[0] + jnp.sum(x * x, axis=0, keepdims=True)


# -------- kernel B: fused GroupNorm-apply + K/V 1x1-conv projections --------

def _kv_proj_kernel(x_ref, a_ref, b_ref, wk_ref, bk_ref, wv_ref, bv_ref,
                    k_ref, v_ref):
    x = x_ref[0].astype(jnp.float32)                        # (Ts, C)
    h = x * a_ref[0] + b_ref[0]                             # single FMA GroupNorm
    hb = h.astype(jnp.bfloat16)
    k = jnp.dot(hb, wk_ref[...], preferred_element_type=jnp.float32) + bk_ref[...]
    v = jnp.dot(hb, wv_ref[...], preferred_element_type=jnp.float32) + bv_ref[...]
    k_ref[0] = k.astype(k_ref.dtype)
    v_ref[0] = v.astype(v_ref.dtype)


# -------- kernel C: flash attention + Q proj + out proj + residual ----------

def _flash_attn_kernel(x_ref, a_ref, b_ref, wq_ref, bq_ref, k_ref, v_ref,
                       wp_ref, bp_ref, o_ref, q_s, m_s, l_s, acc_s):
    ki = pl.program_id(2)

    @pl.when(ki == 0)
    def _():
        # Q projection once per q-tile (GroupNorm apply fused; scale folded
        # into wq/bq on the host).
        x = x_ref[0].astype(jnp.float32)                    # (Tq, C)
        h = x * a_ref[0] + b_ref[0]
        q = jnp.dot(h.astype(jnp.bfloat16), wq_ref[...],
                    preferred_element_type=jnp.float32) + bq_ref[...]
        q_s[...] = q.astype(jnp.bfloat16)
        m_s[...] = jnp.full_like(m_s, -jnp.inf)
        l_s[...] = jnp.zeros_like(l_s)
        acc_s[...] = jnp.zeros_like(acc_s)

    kb = k_ref[0]                                           # (Tk, C) bf16
    vb = v_ref[0]                                           # (Tk, C) bf16

    # q @ k^T without materializing k.T (contract last dims of both).
    s = lax.dot_general(q_s[...], kb,
                        dimension_numbers=(((1,), (1,)), ((), ())),
                        preferred_element_type=jnp.float32)  # (Tq, Tk) f32

    m_new = jnp.maximum(m_s[...], jnp.max(s, axis=-1, keepdims=True))
    alpha = jnp.exp(m_s[...] - m_new)
    p = jnp.exp(s - m_new)
    l_s[...] = alpha * l_s[...] + jnp.sum(p, axis=-1, keepdims=True)
    acc_s[...] = alpha * acc_s[...] + jnp.dot(
        p.astype(jnp.bfloat16), vb, preferred_element_type=jnp.float32)
    m_s[...] = m_new

    @pl.when(ki == pl.num_programs(2) - 1)
    def _():
        attn = acc_s[...] * pl.reciprocal(l_s[...], approx=True)
        proj = jnp.dot(attn.astype(jnp.bfloat16), wp_ref[...],
                       preferred_element_type=jnp.float32) + bp_ref[...]
        o_ref[0] = (x_ref[0].astype(jnp.float32) + proj).astype(o_ref.dtype)


# ------------------------------ wrapper -------------------------------------

def attn_block_forward(x_nchw, params, num_groups=32, eps=1e-5,
                       q_tile=256, kv_tile=512):
    """AttnBlock.forward(x) with cond=None (single-head attention path)."""
    B, C, H, W = x_nchw.shape
    S = H * W
    scale = C ** (-0.5)
    f32, bf16 = jnp.float32, jnp.bfloat16

    # NCHW -> (B, S, C) token layout (matches q.permute(0,2,3,1).view(B,-1,C))
    x = jnp.transpose(x_nchw, (0, 2, 3, 1)).reshape(B, S, C)

    Tq = _pick_tile(S, q_tile)
    Tk = _pick_tile(S, kv_tile)
    nq, nk = S // Tq, S // Tk
    vmem_limit = 64 * 1024 * 1024

    # ---------------- GroupNorm affine (a, b) per (batch, channel) ----------
    if num_groups is None or num_groups == 0:
        a_bc = jnp.ones((B, 1, C), f32)
        b_bc = jnp.zeros((B, 1, C), f32)
    else:
        G = num_groups
        assert C % G == 0
        sums, sumsq = pl.pallas_call(
            _gn_stats_kernel,
            out_shape=(jax.ShapeDtypeStruct((B, 1, C), f32),
                       jax.ShapeDtypeStruct((B, 1, C), f32)),
            grid_spec=pltpu.PrefetchScalarGridSpec(
                num_scalar_prefetch=0,
                grid=(B, nk),
                in_specs=[pl.BlockSpec((1, Tk, C), lambda b, s: (b, s, 0))],
                out_specs=[pl.BlockSpec((1, 1, C), lambda b, s: (b, 0, 0)),
                           pl.BlockSpec((1, 1, C), lambda b, s: (b, 0, 0))]),
            compiler_params=pltpu.CompilerParams(
                dimension_semantics=("parallel", "arbitrary"),
                vmem_limit_bytes=vmem_limit),
        )(x)
        cpg = C // G
        n = jnp.float32(S * cpg)
        sum_g = sums.reshape(B, G, cpg).sum(-1)
        sumsq_g = sumsq.reshape(B, G, cpg).sum(-1)
        mean_g = sum_g / n
        var_g = jnp.maximum(sumsq_g / n - mean_g * mean_g, 0.0)  # clamp >= 0
        rstd_g = lax.rsqrt(var_g + eps)
        mean_c = jnp.repeat(mean_g, cpg, axis=-1)                # (B, C)
        rstd_c = jnp.repeat(rstd_g, cpg, axis=-1)                # (B, C)
        gamma = params["gn_weight"].astype(f32)[None, :]
        beta = params["gn_bias"].astype(f32)[None, :]
        a = gamma * rstd_c
        a_bc = a.reshape(B, 1, C)
        b_bc = (beta - mean_c * a).reshape(B, 1, C)

    # conv weights are (out, in) in torch-style; pass as (in, out) for h @ W.
    # Attention scale folded into Wq / bq; MXU operands cast to bf16 on host.
    wq = (params["wq"].T * scale).astype(bf16)
    wk = params["wk"].T.astype(bf16)
    wv = params["wv"].T.astype(bf16)
    wp = params["wp"].T.astype(bf16)
    bq = (params["bq"] * scale).reshape(1, C).astype(f32)
    bk = params["bk"].reshape(1, C).astype(f32)
    bv = params["bv"].reshape(1, C).astype(f32)
    bp = params["bp"].reshape(1, C).astype(f32)

    # ---------------- K / V projections (bf16 to HBM) -----------------------
    const2d = lambda shape: pl.BlockSpec(shape, lambda b, s: (0, 0))
    k_arr, v_arr = pl.pallas_call(
        _kv_proj_kernel,
        out_shape=(jax.ShapeDtypeStruct((B, S, C), bf16),
                   jax.ShapeDtypeStruct((B, S, C), bf16)),
        grid_spec=pltpu.PrefetchScalarGridSpec(
            num_scalar_prefetch=0,
            grid=(B, nk),
            in_specs=[
                pl.BlockSpec((1, Tk, C), lambda b, s: (b, s, 0)),   # x
                pl.BlockSpec((1, 1, C), lambda b, s: (b, 0, 0)),    # a
                pl.BlockSpec((1, 1, C), lambda b, s: (b, 0, 0)),    # b
                const2d((C, C)), const2d((1, C)),                   # wk, bk
                const2d((C, C)), const2d((1, C)),                   # wv, bv
            ],
            out_specs=[pl.BlockSpec((1, Tk, C), lambda b, s: (b, s, 0)),
                       pl.BlockSpec((1, Tk, C), lambda b, s: (b, s, 0))]),
        compiler_params=pltpu.CompilerParams(
            dimension_semantics=("parallel", "parallel"),
            vmem_limit_bytes=vmem_limit),
    )(x, a_bc, b_bc, wk, bk, wv, bv)

    # ---------------- flash attention + out proj + residual -----------------
    cost = pl.CostEstimate(
        flops=int(B * (4 * S * C * C + 4 * S * S * C)),
        transcendentals=int(B * S * S),
        bytes_accessed=int(B * S * C * (4 + 4 + 2 + 2) + 4 * C * C * 2),
    )
    const3d = lambda shape: pl.BlockSpec(shape, lambda b, qi, ki: (0, 0))
    out = pl.pallas_call(
        _flash_attn_kernel,
        out_shape=jax.ShapeDtypeStruct((B, S, C), x.dtype),
        grid_spec=pltpu.PrefetchScalarGridSpec(
            num_scalar_prefetch=0,
            grid=(B, nq, nk),
            in_specs=[
                pl.BlockSpec((1, Tq, C), lambda b, qi, ki: (b, qi, 0)),  # x (q-tile)
                pl.BlockSpec((1, 1, C), lambda b, qi, ki: (b, 0, 0)),    # a
                pl.BlockSpec((1, 1, C), lambda b, qi, ki: (b, 0, 0)),    # b
                const3d((C, C)), const3d((1, C)),                        # wq, bq (scaled)
                pl.BlockSpec((1, Tk, C), lambda b, qi, ki: (b, ki, 0)),  # k
                pl.BlockSpec((1, Tk, C), lambda b, qi, ki: (b, ki, 0)),  # v
                const3d((C, C)), const3d((1, C)),                        # wp, bp
            ],
            out_specs=pl.BlockSpec((1, Tq, C), lambda b, qi, ki: (b, qi, 0)),
            scratch_shapes=[
                pltpu.VMEM((Tq, C), bf16),    # q tile
                pltpu.VMEM((Tq, 1), f32),     # running max
                pltpu.VMEM((Tq, 1), f32),     # running sum
                pltpu.VMEM((Tq, C), f32),     # output accumulator
            ]),
        compiler_params=pltpu.CompilerParams(
            dimension_semantics=("parallel", "parallel", "arbitrary"),
            vmem_limit_bytes=vmem_limit),
        cost_estimate=cost,
    )(x, a_bc, b_bc, wq, bq, k_arr, v_arr, wp, bp)

    # (B, S, C) -> NCHW  (matches h.view(B, H, W, C).permute(0, 3, 1, 2))
    return jnp.transpose(out.reshape(B, H, W, C), (0, 3, 1, 2))


# ------------------------------ init ----------------------------------------

def init_attn_block_params(key, dim_channels):
    """Deterministic init mirroring AttnBlock.initialize() shapes/strategy."""
    C = dim_channels

    def xavier_uniform(k, fan_out, fan_in, gain=1.0):
        bound = gain * math.sqrt(6.0 / (fan_in + fan_out))
        return jax.random.uniform(k, (fan_out, fan_in), jnp.float32, -bound, bound)

    kq, kk, kv, kp = jax.random.split(key, 4)
    return {
        "gn_weight": jnp.ones((C,), jnp.float32),
        "gn_bias": jnp.zeros((C,), jnp.float32),
        "wq": xavier_uniform(kq, C, C),
        "bq": jnp.zeros((C,), jnp.float32),
        "wk": xavier_uniform(kk, C, C),
        "bk": jnp.zeros((C,), jnp.float32),
        "wv": xavier_uniform(kv, C, C),
        "bv": jnp.zeros((C,), jnp.float32),
        # proj weight re-initialized with gain=1e-5 in the torch module
        "wp": xavier_uniform(kp, C, C, gain=1e-5),
        "bp": jnp.zeros((C,), jnp.float32),
    }


if __name__ == "__main__":
    # Small config consistent with the module defaults: single-head attention
    # (num_heads=None -> 1, dim_head = dim_channels), GroupNorm(32, C).
    # C=128 keeps the last dim lane-dense (128 lanes per vreg).
    B, C, H, W = 2, 128, 8, 8
    NUM_GROUPS = 32

    key = jax.random.PRNGKey(0)
    kx, kparam = jax.random.split(key)
    x = jax.random.normal(kx, (B, C, H, W), jnp.float32)
    params = init_attn_block_params(kparam, C)

    out = attn_block_forward(x, params, num_groups=NUM_GROUPS)
    out = jax.block_until_ready(out)
    assert out.shape == (B, C, H, W) and out.dtype == jnp.float32
    assert bool(jnp.all(jnp.isfinite(out)))
    print("KERNEL_OK")
</pallas_src>

<mosaic_0001>
module attributes {stable_mosaic.version = 11 : i64} {
  func.func @_gn_stats_kernel(%arg0: i32, %arg1: i32, %arg2: memref<1x64x128xf32, #tpu.memory_space<vmem>>, %arg3: memref<1x1x128xf32, #tpu.memory_space<vmem>>, %arg4: memref<1x1x128xf32, #tpu.memory_space<vmem>>) attributes {dimension_semantics = [#tpu.dimension_semantics<parallel>, #tpu.dimension_semantics<arbitrary>], iteration_bounds = array<i64: 2, 1>, scalar_prefetch = 0 : i64, scratch_operands = 0 : i64, tpu.core_type = #tpu.core_type<tc>, window_params = [{transform_indices = @transform_0, window_bounds = array<i64: 1, 64, 128>}, {transform_indices = @transform_1, window_bounds = array<i64: 1, 1, 128>}, {transform_indices = @transform_2, window_bounds = array<i64: 1, 1, 128>}]} {
    %c0_i32 = arith.constant 0 : i32
    %0 = arith.cmpi eq, %arg1, %c0_i32 : i32
    %1 = arith.extui %0 : i1 to i32
    %c0_i32_0 = arith.constant 0 : i32
    %2 = arith.cmpi ne, %1, %c0_i32_0 : i32
    scf.if %2 {
      %cst_16 = arith.constant 0.000000e+00 : f32
      %22 = vector.broadcast %cst_16 : f32 to vector<1x1x128xf32>
      %c0_17 = arith.constant 0 : index
      %c0_18 = arith.constant 0 : index
      %c0_19 = arith.constant 0 : index
      %23 = vector.load %arg3[%c0_17, %c0_18, %c0_19] : memref<1x1x128xf32, #tpu.memory_space<vmem>>, vector<1x1x128xf32>
      tpu.vector_store %arg3[%c0_17, %c0_18, %c0_19], %22 {strides = array<i32>} : memref<1x1x128xf32, #tpu.memory_space<vmem>>, vector<1x1x128xf32>,
      %cst_20 = arith.constant 0.000000e+00 : f32
      %24 = vector.broadcast %cst_20 : f32 to vector<1x1x128xf32>
      %c0_21 = arith.constant 0 : index
      %c0_22 = arith.constant 0 : index
      %c0_23 = arith.constant 0 : index
      %25 = vector.load %arg4[%c0_21, %c0_22, %c0_23] : memref<1x1x128xf32, #tpu.memory_space<vmem>>, vector<1x1x128xf32>
      tpu.vector_store %arg4[%c0_21, %c0_22, %c0_23], %24 {strides = array<i32>} : memref<1x1x128xf32, #tpu.memory_space<vmem>>, vector<1x1x128xf32>,
    } else {
    }
    %c0 = arith.constant 0 : index
    %c0_1 = arith.constant 0 : index
    %c0_2 = arith.constant 0 : index
    %3 = vector.load %arg2[%c0, %c0_1, %c0_2] : memref<1x64x128xf32, #tpu.memory_space<vmem>>, vector<1x64x128xf32>
    %4 = vector.shape_cast %3 : vector<1x64x128xf32> to vector<64x128xf32>
    %c0_3 = arith.constant 0 : index
    %c0_4 = arith.constant 0 : index
    %c0_5 = arith.constant 0 : index
    %5 = vector.load %arg3[%c0_3, %c0_4, %c0_5] : memref<1x1x128xf32, #tpu.memory_space<vmem>>, vector<1x1x128xf32>
    %6 = vector.shape_cast %5 : vector<1x1x128xf32> to vector<1x128xf32>
    %cst = arith.constant dense<0.000000e+00> : vector<128xf32>
    %7 = vector.multi_reduction <add>, %4, %cst [0] : vector<64x128xf32> to vector<128xf32>
    %8 = vector.shape_cast %7 : vector<128xf32> to vector<1x128xf32>
    %9 = arith.addf %6, %8 : vector<1x128xf32>
    %c0_6 = arith.constant 0 : index
    %c0_7 = arith.constant 0 : index
    %c0_8 = arith.constant 0 : index
    %10 = vector.load %arg3[%c0_6, %c0_7, %c0_8] : memref<1x1x128xf32, #tpu.memory_space<vmem>>, vector<1x1x128xf32>
    %11 = vector.shape_cast %10 : vector<1x1x128xf32> to vector<1x128xf32>
    %12 = vector.shape_cast %9 : vector<1x128xf32> to vector<1x1x128xf32>
    tpu.vector_store %arg3[%c0_6, %c0_7, %c0_8], %12 {strides = array<i32>} : memref<1x1x128xf32, #tpu.memory_space<vmem>>, vector<1x1x128xf32>,
    %c0_9 = arith.constant 0 : index
    %c0_10 = arith.constant 0 : index
    %c0_11 = arith.constant 0 : index
    %13 = vector.load %arg4[%c0_9, %c0_10, %c0_11] : memref<1x1x128xf32, #tpu.memory_space<vmem>>, vector<1x1x128xf32>
    %14 = vector.shape_cast %13 : vector<1x1x128xf32> to vector<1x128xf32>
    %15 = arith.mulf %4, %4 : vector<64x128xf32>
    %cst_12 = arith.constant dense<0.000000e+00> : vector<128xf32>
    %16 = vector.multi_reduction <add>, %15, %cst_12 [0] : vector<64x128xf32> to vector<128xf32>
    %17 = vector.shape_cast %16 : vector<128xf32> to vector<1x128xf32>
    %18 = arith.addf %14, %17 : vector<1x128xf32>
    %c0_13 = arith.constant 0 : index
    %c0_14 = arith.constant 0 : index
    %c0_15 = arith.constant 0 : index
    %19 = vector.load %arg4[%c0_13, %c0_14, %c0_15] : memref<1x1x128xf32, #tpu.memory_space<vmem>>, vector<1x1x128xf32>
    %20 = vector.shape_cast %19 : vector<1x1x128xf32> to vector<1x128xf32>
    %21 = vector.shape_cast %18 : vector<1x128xf32> to vector<1x1x128xf32>
    tpu.vector_store %arg4[%c0_13, %c0_14, %c0_15], %21 {strides = array<i32>} : memref<1x1x128xf32, #tpu.memory_space<vmem>>, vector<1x1x128xf32>,
    return
  }
  func.func @transform_0(%arg0: i32, %arg1: i32) -> (i32, i32, i32) {
    %c0_i32 = arith.constant 0 : i32
    %c0_i32_0 = arith.constant 0 : i32
    return %arg0, %arg1, %c0_i32 : i32, i32, i32
  }
  func.func @transform_1(%arg0: i32, %arg1: i32) -> (i32, i32, i32) {
    %c0_i32 = arith.constant 0 : i32
    %c0_i32_0 = arith.constant 0 : i32
    %c0_i32_1 = arith.constant 0 : i32
    return %arg0, %c0_i32, %c0_i32_0 : i32, i32, i32
  }
  func.func @transform_2(%arg0: i32, %arg1: i32) -> (i32, i32, i32) {
    %c0_i32 = arith.constant 0 : i32
    %c0_i32_0 = arith.constant 0 : i32
    %c0_i32_1 = arith.constant 0 : i32
    return %arg0, %c0_i32, %c0_i32_0 : i32, i32, i32
  }
}

</mosaic_0001>

<bundles_post_ra>
// kernel: tpu_custom_call.1
= control target key start
LH: loop header
LB: loop body
LE: loop exit
PB: predicated region body
PF: predicated region fallthrough
CT: control target
= control target key end

     0   :  { %8 = vsyncpa [#allocation3], 0  ;;  %s808_s0 = inlined_call_operand.hbm [shape: f32[2,64,128], index: 0, kind: input, shape index: {}]   ;;  %s809_s1 = inlined_call_operand.hbm [shape: f32[2,1,128], index: 1, kind: output, shape index: {0}]   ;;  %s810_s2 = inlined_call_operand.hbm [shape: f32[2,1,128], index: 2, kind: output, shape index: {1}]  }
   0x1   :  { %10 = vsyncpa [#allocation3 + $0x1], 0 }
   0x2   :  { %11 = vsyncpa [#allocation4], 0 }
   0x3   :  { %13 = vsyncpa [#allocation4 + $0x1], 0 }
   0x4   :  { %14 = vsyncpa [#allocation7], 0 }
   0x5   :  { %16 = vsyncpa [#allocation7 + $0x1], 0  ;;  %s622_s9 = smov 0   ;;  %s624_s10 = smov 0  }
   0x6   :  { %s626_s11 = smov 0   ;;  %s628_s12 = smov 0  }
   0x7   :  { %s630_s13 = smov 0   ;;  %s632_s14 = smov 0  }
   0x8 LB: > { %s377_s15 = sadd.s32 4294967295, %s599_s14   ;;  %s378_s16 = sadd.s32 4294967294, %s599_s14   ;;  %s599_s14 = sphi %s632_s14, %s22_s14   ;;  %s595_s13 = sphi %s630_s13, %s821_s13   ;;  %s591_s12 = sphi %s628_s12, %s820_s12   ;;  %s587_s11 = sphi %s626_s11, %s819_s11   ;;  %s583_s10 = sphi %s624_s10, %s818_s10   ;;  %s579_s9 = sphi %s622_s9, %s817_s9  }
   0x9   : > { %s34_s17 = sadd.s32 1, %s595_s13  ;;  %s43_s18 = sadd.s32 1, %s587_s11 }
   0xa   : > { %p36_p0 = scmp.ge.s32.totalorder %s34_s17, 2  ;;  %p50_p1 = scmp.ne.s32.totalorder %s587_s11, %s583_s10 }
   0xb   : > { %p51_p2 = scmp.eq.s32.totalorder %s599_s14, 0  ;;  %p56_p3 = scmp.ne.s32.totalorder %s583_s10, %s579_s9 }
   0xc   : > { %s823_s17 = smov (%p36_p0, %s34_s17), 0  ;;  %p57_p5 = scmp.eq.s32.totalorder %s377_s15, 0 }
   0xd   : > { %p663_p4 = por %p51_p2, %p50_p1  ;;  %s38_s20 = ssub.s32 %s595_s13, %s823_s17 }
   0xe   : > { %p80_p6 = scmp.eq.s32.totalorder %s377_s15, 1  ;;  %p41_p7 = scmp.eq.s32.totalorder %s38_s20, 0 }
   0xf   : > { %p669_p8 = por %p57_p5, %p56_p3  ;;  %p86_p10 = scmp.eq.s32.totalorder %s378_s16, 1 }
  0x10   : > { %p673_p9 = por %p80_p6, %p50_p1  ;;  %p408_p13 = scmp.lt.s32.totalorder %s599_s14, 2 }
  0x11   : > { %s678_s23 = scalar_select %p41_p7, %s587_s11, %s43_s18  }
  0x12   : > { %p680_p11 = por %p86_p10, %p56_p3  ;;  %s132_s25 = sand.u32 1, %s587_s11  }
  0x13   : > { %s381_s26 = sshll.u32 %s132_s25, 6  ;;  %s390_s27 = sshll.u32 %s595_s13, 10 }
  0x14   : > { %s144_s30 = scalar_lea.hbm %s808_s0, %s390_s27  ;;  %s136_s3 = scalar_lea.vmem [#allocation2], %s381_s26 }
  0x15   : > { %s145_s4 = sshll.u32 %s136_s3, 4  ;;  %p693_p0 = pnand %p408_p13, %p663_p4  ;;  %s146_s4 = int_to_ptr.vmem [resolvable:$true] %s145_s4 }
  0x16   : > { %p384_p1 = scmp.ge.s32.totalorder %s599_s14, 1  ;;  %s133_s6 = scalar_lea.sflag [#allocation3], %s132_s25 }
  0x17   : > { %p463_p2 = pneg %p693_p0  ;;  %s474_s7 = scalar_lea.vmem %s146_s4, 1024 }
  0x18   : > { %p475_p3 = scmp.ne.s32.totalorder %s146_s4, %s474_s7  ;;  %s601_s8 = smov [#allocation2]  }
  0x19   : > { %s479_s15 = sshll.u32 %s601_s8, 4  ;;  %s480_s15 = int_to_ptr.vmem [resolvable:$false] %s479_s15 }
  0x1a   : > { %p477_p5 = pnand %p475_p3, %p463_p2  ;;  %s481_s16 = scalar_lea.vmem %s480_s15, 2048 }
  0x1b   : > { %p482_p7 = scmp.lt.s32.totalorder %s146_s4, %s480_s15  ;;  %p483_p10 = scmp.lt.s32.totalorder %s481_s16, %s474_s7 }
  0x1c   : > { %p478_p6 = pneg %p477_p5 }
  0x1d   : > { %p484_p12 = por %p483_p10, %p482_p7 }
  0x1f   : > { %p485_p4 = pnand %p484_p12, %p478_p6 }
  0x21   : > { %488 = shalt.err (!%p485_p4)
}
  0x22   : > { %s602_s18 = smov 128   ;;  %s603_s19 = smov 8  }
  0x23   : > { %400 = dma.hbm_to_vmem [thread:$0]  (!%p693_p0), %s144_s30, 1024, %s146_s4, %s133_s6, %s602_s18, %s602_s18, %s603_s19  }
  0x24   : > { %p153_p13 = scmp.lt.s32.totalorder %s599_s14, 3 }
  0x26   : > { %p154_p2 = pnand %p384_p1, %p153_p13 }
  0x27   : > { %s706_s20 = sand.u32 (!%p154_p2), 1, %s583_s10  }
  0x28   : > { %157 = sbr.rel (%p154_p2) target bundleno = 110 (0x6e), region = 24  ;;  %s385_s25 = sshll.u32 (!%p154_p2), %s706_s20, 6 }
  0x29   : > { %s160_s26 = scalar_lea.sflag (!%p154_p2), [#allocation3], %s706_s20  ;;  %s163_s27 = scalar_lea.vmem (!%p154_p2), [#allocation2], %s385_s25 }
  0x2d   : > { %566 = dma.done.wait (%p669_p8), %s160_s26, 1024  }
  0x2e   : > { %568 = vsyncadd (%p669_p8), %s160_s26, 4294966272  ;;  %s715_s28 = scalar_lea.vmem [#allocation5], %s706_s20  ;;  %v604_v0 = vmov 0.0   ;;  %s719_s29 = scalar_lea.vmem [#allocation6], %s706_s20  ;;  %v194_v1 = vld [vmem:[%s163_s27] sm:$0xff]  ;;  %v195_v2 = vld [vmem:[%s163_s27 + $0x8] sm:$0xff] }
  0x2f   : > { %192 = vst [vmem:[%s715_s28] sm:$0x1] %v604_v0  ;;  %193 = vst [vmem:[%s719_s29] sm:$0x1] %v604_v0  ;;  %v196_v3 = vld [vmem:[%s163_s27 + $0x10] sm:$0xff]  ;;  %v197_v4 = vld [vmem:[%s163_s27 + $0x18] sm:$0xff]  ;;  %v203_v5 = vadd.f32 %v195_v2, %v194_v1  ;;  %v219_v6 = vmul.f32 %v194_v1, %v194_v1  ;;  %v220_v7 = vmul.f32 %v195_v2, %v195_v2  ;;  %s386_s21 = sshll.u32 %s591_s12, 4  ;;  %s259_s30 = sshll.u32 %s715_s28, 4  ;;  %s732_s30 = int_to_ptr.vmem [resolvable:$true] %s259_s30 }
  0x30   : > { %v221_v8 = vmul.f32 %v196_v3, %v196_v3  ;;  %v198_v9 = vld [vmem:[%s163_s27 + $0x20] sm:$0xff]  ;;  %v222_v11 = vmul.f32 %v197_v4, %v197_v4  ;;  %v199_v13 = vld [vmem:[%s163_s27 + $0x28] sm:$0xff]  ;;  %v200_v17 = vld [vmem:[%s163_s27 + $0x30] sm:$0xff]  ;;  %s272_s3 = sshll.u32 %s719_s29, 4  ;;  %s730_s6 = scalar_lea.hbm %s809_s1, %s386_s21  ;;  %s740_s3 = int_to_ptr.vmem [resolvable:$true] %s272_s3 }
  0x31   : > { %v204_v10 = vadd.f32 %v203_v5, %v196_v3  ;;  %v227_v12 = vadd.f32 %v220_v7, %v219_v6  ;;  %v223_v15 = vmul.f32 %v198_v9, %v198_v9  ;;  %v224_v19 = vmul.f32 %v199_v13, %v199_v13  ;;  %v201_v21 = vld [vmem:[%s163_s27 + $0x38] sm:$0xff]  ;;  %s738_s8 = scalar_lea.hbm %s810_s2, %s386_s21  ;;  %s243_s15 = scalar_lea.sflag [#allocation4], %s706_s20 }
  0x32   : > { %v225_v23 = vmul.f32 %v200_v17, %v200_v17  ;;  %v226_v26 = vmul.f32 %v201_v21, %v201_v21  ;;  %s489_s16 = scalar_lea.vmem %s732_s30, 16  ;;  %s605_s18 = smov [#allocation5]  }
  0x33   : > { %v205_v14 = vadd.f32 %v204_v10, %v197_v4  ;;  %v228_v16 = vadd.f32 %v227_v12, %v221_v8  ;;  %p490_p8 = scmp.ne.s32.totalorder %s732_s30, %s489_s16  ;;  %s493_s19 = sshll.u32 %s605_s18, 4  ;;  %s494_s19 = int_to_ptr.vmem [resolvable:$false] %s493_s19 }
  0x34   : > { %s495_s25 = scalar_lea.vmem %s494_s19, 32  ;;  %p496_p1 = scmp.lt.s32.totalorder %s732_s30, %s494_s19 }
  0x35   : > { %v206_v18 = vadd.f32 %v205_v14, %v198_v9  ;;  %v229_v20 = vadd.f32 %v228_v16, %v222_v11  ;;  %p491_p12 = pnand %p490_p8, %p673_p9  ;;  %p497_p3 = scmp.lt.s32.totalorder %s495_s25, %s489_s16 }
  0x36   : > { %v202_v40 = vld [vmem:[%s715_s28] sm:$0x1] }
  0x37   : > { %v207_v22 = vadd.f32 %v206_v18, %v199_v13  ;;  %v230_v24 = vadd.f32 %v229_v20, %v223_v15  ;;  %v218_v43 = vld [vmem:[%s719_s29] sm:$0x1]  ;;  %p492_p0 = pneg %p491_p12  ;;  %p498_p5 = por %p497_p3, %p496_p1 }
  0x39   : > { %v208_v25 = vadd.f32 %v207_v22, %v200_v17  ;;  %v231_v27 = vadd.f32 %v230_v24, %v224_v19  ;;  %p499_p6 = pnand %p498_p5, %p492_p0 }
  0x3b   : > { %v209_v28 = vadd.f32 %v208_v25, %v201_v21  ;;  %v232_v29 = vadd.f32 %v231_v27, %v225_v23 }
  0x3d   : > { %v210_v30 = vrot.slane %v209_v28, 4  ;;  %v233_v31 = vadd.f32 %v232_v29, %v226_v26 }
  0x3f   : > { %v211_v32 = vadd.f32 %v210_v30, %v209_v28  ;;  %v234_v33 = vrot.slane %v233_v31, 4 }
  0x41   : > { %v212_v34 = vrot.slane %v211_v32, 2  ;;  %v235_v35 = vadd.f32 %v234_v33, %v233_v31 }
  0x43   : > { %v213_v36 = vadd.f32 %v212_v34, %v211_v32  ;;  %v236_v37 = vrot.slane %v235_v35, 2 }
  0x45   : > { %v214_v38 = vrot.slane %v213_v36, 1  ;;  %v237_v39 = vadd.f32 %v236_v37, %v235_v35 }
  0x47   : > { %v215_v41 = vadd.f32 %v214_v38, %v213_v36  ;;  %v238_v42 = vrot.slane %v237_v39, 1 }
  0x49   : > { %v216_v44 = vadd.f32 %v215_v41, %v202_v40  ;;  %v239_v45 = vadd.f32 %v238_v42, %v237_v39 }
  0x4b   : > { %217 = vst [vmem:[%s715_s28] sm:$0x1] %v216_v44  ;;  %v240_v46 = vadd.f32 %v239_v45, %v218_v43 }
  0x4c   : > { %502 = shalt.err (!%p499_p6)
}
  0x4d   : > { %s503_s26 = scalar_lea.hbm %s730_s6, 16  ;;  %s507_s21 = scalar_lea.hbm %s809_s1, 32 }
  0x4e   : > { %p504_p7 = scmp.ne.s32.totalorder %s730_s6, %s503_s26  ;;  %p508_p13 = scmp.lt.s32.totalorder %s730_s6, %s809_s1 }
  0x4f   : > { %p509_p2 = scmp.lt.s32.totalorder %s507_s21, %s503_s26 }
  0x50   : > { %p505_p10 = pnand %p504_p7, %p673_p9 }
  0x51   : > { %p510_p8 = por %p509_p2, %p508_p13 }
  0x52   : > { %p506_p4 = pneg %p505_p10 }
  0x54   : > { %p511_p12 = pnand %p510_p8, %p506_p4 }
  0x56   : > { %514 = shalt.err (!%p511_p12)
}
  0x57   : > { %393 = dma.vmem_to_hbm [thread:$0]  (%p673_p9), %s732_s30, 16, %s730_s6, %s243_s15   ;;  %241 = vst [vmem:[%s719_s29] sm:$0x1] %v240_v46 }
  0x58   : > { %s247_s12 = scalar_lea.sflag [#allocation7], %s706_s20  ;;  %s515_s7 = scalar_lea.vmem %s740_s3, 16 }
  0x59   : > { %p516_p0 = scmp.ne.s32.totalorder %s740_s3, %s515_s7  ;;  %s606_s16 = smov [#allocation6]  }
  0x5a   : > { %s519_s18 = sshll.u32 %s606_s16, 4  ;;  %s520_s18 = int_to_ptr.vmem [resolvable:$false] %s519_s18 }
  0x5b   : > { %p517_p1 = pnand %p516_p0, %p673_p9  ;;  %s521_s19 = scalar_lea.vmem %s520_s18, 32 }
  0x5c   : > { %p522_p5 = scmp.lt.s32.totalorder %s740_s3, %s520_s18  ;;  %p523_p6 = scmp.lt.s32.totalorder %s521_s19, %s515_s7 }
  0x5d   : > { %p518_p3 = pneg %p517_p1 }
  0x5e   : > { %p524_p7 = por %p523_p6, %p522_p5 }
  0x60   : > { %p525_p10 = pnand %p524_p7, %p518_p3 }
  0x62   : > { %528 = shalt.err (!%p525_p10)
}
  0x63   : > { %s529_s29 = scalar_lea.hbm %s738_s8, 16  ;;  %s533_s6 = scalar_lea.hbm %s810_s2, 32 }
  0x64   : > { %p530_p4 = scmp.ne.s32.totalorder %s738_s8, %s529_s29  ;;  %p534_p8 = scmp.lt.s32.totalorder %s738_s8, %s810_s2 }
  0x65   : > { %p535_p12 = scmp.lt.s32.totalorder %s533_s6, %s529_s29 }
  0x66   : > { %p531_p13 = pnand %p530_p4, %p673_p9 }
  0x67   : > { %p536_p0 = por %p535_p12, %p534_p8 }
  0x68   : > { %p532_p2 = pneg %p531_p13 }
  0x6a   : > { %p537_p1 = pnand %p536_p0, %p532_p2 }
  0x6c   : > { %540 = shalt.err (!%p537_p1)
}
  0x6d   : > { %394 = dma.vmem_to_hbm [thread:$0]  (%p673_p9), %s740_s3, 16, %s738_s8, %s247_s12  }
  0x6e PF: > { %s284_s26 = sand.u32 1, %s579_s9   ;;  %p816_p3 = scmp.ge.s32.totalorder %s599_s14, 2 }
  0x6f   : > { %s285_s27 = scalar_lea.sflag [#allocation4], %s284_s26 }
  0x70   : > { %p402_p5 = pnand %p816_p3, %p680_p11 }
  0x72   : > { %p403_p6 = pneg %p402_p5 }
  0x74   : > { %570 = dma.done.wait (%p403_p6), %s285_s27, 16  }
  0x75   : > { %572 = vsyncadd (%p403_p6), %s285_s27, 4294967280  ;;  %s293_s28 = scalar_lea.sflag [#allocation7], %s284_s26 }
  0x76   : > { %574 = dma.done.wait (%p403_p6), %s293_s28, 16  }
  0x77   : > { %576 = vsyncadd (%p403_p6), %s293_s28, 4294967280  ;;  %s22_s14 = sadd.s32 1, %s599_s14   ;;  %s817_s9 = smov %s583_s10 }
  0x78   : > { %p19_p7 = scmp.ge.s32.totalorder %s22_s14, 4   ;;  %s818_s10 = smov %s587_s11 }
  0x79   : > { %s819_s11 = smov %s678_s23  ;;  %s820_s12 = smov %s595_s13 }
  0x7a   : > { %s821_s13 = smov %s823_s17  ;;  %21 = sbr.rel (!%p19_p7) target bundleno = 8 (0x8), region = 90 }
  0x7f   :  { %297 = vsyncpa [#allocation3], 1 }
  0x80   :  { %299 = vsyncpa [#allocation3 + $0x1], 1 }
  0x81   :  { %300 = vsyncpa [#allocation4], 1 }
  0x82   :  { %302 = vsyncpa [#allocation4 + $0x1], 1 }
  0x83   :  { %303 = vsyncpa [#allocation7], 1 }
  0x84   :  { %305 = vsyncpa [#allocation7 + $0x1], 1 }

</bundles_post_ra>
